<compile_context>
chip_gen: v7x
topology: tpu7x:2x2x1
jax: 0.10.0
libtpu: 0.0.40
codegen_flags: <defaults>
</compile_context>

<pallas_src>
import jax
import jax.numpy as jnp
import numpy as np
from jax.experimental import pallas as pl
from jax.experimental.pallas import tpu as pltpu

# ----------------------------- configuration ------------------------------ #
B, H, W = 2, 16, 16          # the module hardcodes h=16, w=16 in its rearrange
HW = H * W
C_BB = 32                    # backbone patch-token channel dim (small synthetic)
NUM_PROTOTYPES = 20
PROTO_DIM = 16
PROTO_SIZE = 1               # prototype_shape = (P, D, 1, 1) -> stride = 1
NUM_CLASSES = 4              # 20 % 4 == 0 -> 5 prototypes per class
EPSILON = 1e-4
ACTIVATION_FN = "log"

LANE = 128


def _pad_up(n, m):
    return ((n + m - 1) // m) * m


D_PAD = _pad_up(max(PROTO_DIM + 1, LANE), LANE)    # 128  (lane-dense proto_dim, +1 bias lane)
P_PAD = _pad_up(max(NUM_PROTOTYPES, LANE), LANE)   # 128  (lane-dense prototypes)
C_PAD = _pad_up(max(NUM_CLASSES, LANE), LANE)      # 128  (lane-dense classes)

assert PROTO_DIM + 1 <= D_PAD                      # room for the ||p||^2 bias lane


# ------------------------------ Pallas kernel ------------------------------ #
def protopnet_kernel(x_ref, wproj_ref, bproj_ref, m2proto_ref, fcw_ref,
                     f_ref, dists_ref, mind_ref, act_ref, logits_ref):
    x = x_ref[...]                                        # (HW, C_BB)

    # --- proj: 1x1 conv == per-pixel matmul over channels (MXU, M = HW = 256) ---
    # Lane PROTO_DIM of bproj is 1.0 (its wproj column is 0), so f carries a
    # constant 1.0 there; all other padded lanes are exactly 0.
    f = jnp.dot(x, wproj_ref[...], preferred_element_type=jnp.float32) + bproj_ref[...]
    f_ref[...] = f                                        # lane-dense (HW, D_PAD)

    # --- _l2_dists (proto_size=1, stride=1) ----------------------------------
    #   ||f||^2 (+1 from the bias lane)  +  f . [-2p ; (||p||^2 - 1)]  == l2 dist
    x2 = jnp.sum(f * f, axis=-1, keepdims=True)           # (HW, 1)
    xp2 = jnp.dot(f, m2proto_ref[...], preferred_element_type=jnp.float32)  # (HW, P_PAD)
    dists = jnp.maximum(x2 + xp2, 0.0)                    # relu clamp
    dists_ref[...] = dists                                # lane-dense (HW, P_PAD)
    # NOTE: padded prototype lanes of dists/min/act carry relu(||f||^2+1)-derived
    # garbage; fcw's padded rows are 0 and the wrapper slices them off.

    # --- min_dists = -maxpool(-dists): one sublane reduce over the whole image --
    mind = jnp.min(dists, axis=0, keepdims=True)          # (1, P_PAD)
    mind_ref[...] = mind.reshape(1, 1, P_PAD)

    # --- distance_to_similarity + fc ------------------------------------------
    if ACTIVATION_FN == "log":
        act = jnp.log((mind + 1.0) / (mind + EPSILON))
    else:
        act = -mind
    act_ref[...] = act.reshape(1, 1, P_PAD)
    logits = jnp.dot(act, fcw_ref[...], preferred_element_type=jnp.float32)
    logits_ref[...] = logits.reshape(1, 1, C_PAD)


# ---------------------- one-time padded weight preparation ------------------ #
def prepare_padded_params(wproj, bproj, proto, fcw):
    """Built once per model; padded rows/cols are exactly 0 except the bias-lane trick."""
    proto_mat = proto.reshape(NUM_PROTOTYPES, PROTO_DIM).astype(jnp.float32)
    p2 = jnp.sum(proto_mat * proto_mat, axis=-1)                       # (P,)

    wproj_t = jnp.zeros((C_BB, D_PAD), jnp.float32).at[:, :PROTO_DIM].set(
        jnp.transpose(wproj).astype(jnp.float32))
    # Bias row: real bias in lanes [0, PROTO_DIM), constant 1.0 in lane PROTO_DIM.
    bproj_row = (jnp.zeros((1, D_PAD), jnp.float32)
                 .at[:, :PROTO_DIM].set(bproj.reshape(1, PROTO_DIM).astype(jnp.float32))
                 .at[:, PROTO_DIM].set(1.0))
    # Contraction matrix: rows [0, PROTO_DIM) = -2 * prototypes^T,
    # row PROTO_DIM = (||p||^2 - 1)  (the -1 cancels the bias lane's +1 in ||f||^2).
    m2proto_t = (jnp.zeros((D_PAD, P_PAD), jnp.float32)
                 .at[:PROTO_DIM, :NUM_PROTOTYPES].set(-2.0 * jnp.transpose(proto_mat))
                 .at[PROTO_DIM, :NUM_PROTOTYPES].set(p2 - 1.0))
    fcw_t = jnp.zeros((P_PAD, C_PAD), jnp.float32).at[:NUM_PROTOTYPES, :NUM_CLASSES].set(
        jnp.transpose(fcw).astype(jnp.float32))
    return wproj_t, bproj_row, m2proto_t, fcw_t


# --------------------------------- wrapper --------------------------------- #
@jax.jit
def protopnet_forward(x_tokens, wproj_t, bproj_row, m2proto_t, fcw_t):
    """x_tokens: (B, H*W, C_BB) == backbone 'x_norm_patchtokens' (f32)."""
    # rearrange 'b (h w) c -> b c h w' is absorbed into the channels-last flat layout
    x_flat = x_tokens.reshape(B * HW, C_BB).astype(jnp.float32)

    grid = (B,)
    row_map = lambda b: (b, 0)            # one full image (HW rows) per grid step
    const_map = lambda b: (0, 0)
    batch_map = lambda b: (b, 0, 0)

    out_shapes = (
        jax.ShapeDtypeStruct((B * HW, D_PAD), jnp.float32),   # f (flat, padded)
        jax.ShapeDtypeStruct((B * HW, P_PAD), jnp.float32),   # dists (flat, padded)
        jax.ShapeDtypeStruct((B, 1, P_PAD), jnp.float32),     # min_dists (padded)
        jax.ShapeDtypeStruct((B, 1, P_PAD), jnp.float32),     # activations (padded)
        jax.ShapeDtypeStruct((B, 1, C_PAD), jnp.float32),     # logits (padded)
    )
    in_specs = [
        pl.BlockSpec((HW, C_BB), row_map),
        pl.BlockSpec((C_BB, D_PAD), const_map),
        pl.BlockSpec((1, D_PAD), const_map),
        pl.BlockSpec((D_PAD, P_PAD), const_map),
        pl.BlockSpec((P_PAD, C_PAD), const_map),
    ]
    out_specs = (
        pl.BlockSpec((HW, D_PAD), row_map),
        pl.BlockSpec((HW, P_PAD), row_map),
        pl.BlockSpec((1, 1, P_PAD), batch_map),
        pl.BlockSpec((1, 1, P_PAD), batch_map),
        pl.BlockSpec((1, 1, C_PAD), batch_map),
    )

    f_pad, dists_pad, mind_pad, act_pad, logits_pad = pl.pallas_call(
        protopnet_kernel,
        out_shape=out_shapes,
        grid=grid,
        in_specs=in_specs,
        out_specs=out_specs,
        compiler_params=pltpu.CompilerParams(
            dimension_semantics=("parallel",)),   # batch axis -> both v7x TCs
    )(x_flat, wproj_t, bproj_row, m2proto_t, fcw_t)

    # Slice off padded lanes and reconstruct PyTorch NCHW outputs.
    # Fused into a single copy each under jit (slice + reshape + transpose).
    f_nchw = jnp.transpose(
        f_pad.reshape(B, H, W, D_PAD)[..., :PROTO_DIM], (0, 3, 1, 2))
    dists_nchw = jnp.transpose(
        dists_pad.reshape(B, H, W, P_PAD)[..., :NUM_PROTOTYPES], (0, 3, 1, 2))
    min_dists = mind_pad[:, 0, :NUM_PROTOTYPES]
    activations = act_pad[:, 0, :NUM_PROTOTYPES]
    logits = logits_pad[:, 0, :NUM_CLASSES]

    return dict(projected_features=f_nchw,
                min_dists=min_dists,
                l2_dists=dists_nchw,
                activations=activations,
                logits=logits)


# ---------------------------- pure-JAX reference --------------------------- #
def reference_forward(x_tokens, wproj, bproj, proto, fcw):
    f = jnp.einsum("bnc,dc->bnd", x_tokens, wproj) + bproj[None, None, :]
    pr = proto.reshape(NUM_PROTOTYPES, PROTO_DIM)
    x2 = jnp.sum(f * f, axis=-1, keepdims=True)
    p2 = jnp.sum(pr * pr, axis=-1)
    xp = jnp.einsum("bnd,pd->bnp", f, pr)
    dists = jnp.maximum(x2 - 2.0 * xp + p2[None, None, :], 0.0)     # (B, HW, P)
    mind = jnp.min(dists, axis=1)                                    # (B, P)
    act = jnp.log((mind + 1.0) / (mind + EPSILON))
    logits = act @ fcw.T
    f_nchw = jnp.transpose(f.reshape(B, H, W, PROTO_DIM), (0, 3, 1, 2))
    dists_nchw = jnp.transpose(dists.reshape(B, H, W, NUM_PROTOTYPES), (0, 3, 1, 2))
    return dict(projected_features=f_nchw, min_dists=mind, l2_dists=dists_nchw,
                activations=act, logits=logits)


# ------------------------------ deterministic init ------------------------- #
def init_params():
    key = jax.random.PRNGKey(0)
    k_proj, k_proto = jax.random.split(key, 2)

    # proj: 1x1 Conv2d(C_BB -> PROTO_DIM), kaiming_normal fan_out / relu, zero bias
    fan_out = PROTO_DIM * 1 * 1
    wproj = jax.random.normal(k_proj, (PROTO_DIM, C_BB), jnp.float32) * np.sqrt(2.0 / fan_out)
    bproj = jnp.zeros((PROTO_DIM,), jnp.float32)

    # prototype_vectors ~ U[0,1), shape (P, D, 1, 1)
    proto = jax.random.uniform(k_proto, (NUM_PROTOTYPES, PROTO_DIM, PROTO_SIZE, PROTO_SIZE),
                               jnp.float32)

    # proto_class_association + fc weight = 1*pos - 0.5*neg
    num_per_class = NUM_PROTOTYPES // NUM_CLASSES
    assoc = np.zeros((NUM_PROTOTYPES, NUM_CLASSES), np.float32)
    for j in range(NUM_PROTOTYPES):
        assoc[j, j // num_per_class] = 1.0
    pos = assoc.T
    fcw = jnp.asarray(1.0 * pos - 0.5 * (1.0 - pos), jnp.float32)   # (NUM_CLASSES, P)

    return wproj, bproj, proto, fcw


# ----------------------------------- main ----------------------------------- #
if __name__ == "__main__":
    key = jax.random.PRNGKey(0)
    # TODO(synk): DINOv2 backbone not implemented; use synthetic patch tokens.
    x_tokens = jax.random.normal(jax.random.fold_in(key, 7), (B, HW, C_BB), jnp.float32)

    wproj, bproj, proto, fcw = init_params()
    padded = prepare_padded_params(wproj, bproj, proto, fcw)   # once per model

    out = protopnet_forward(x_tokens, *padded)
    jax.block_until_ready(out)

    ref = reference_forward(x_tokens, wproj, bproj, proto, fcw)
    for name in ("projected_features", "l2_dists", "min_dists", "activations", "logits"):
        np.testing.assert_allclose(np.asarray(out[name]), np.asarray(ref[name]),
                                   rtol=1e-4, atol=1e-4)
        assert out[name].shape == ref[name].shape, name

    print("KERNEL_OK")
</pallas_src>

<mosaic_0001>
module attributes {stable_mosaic.version = 11 : i64} {
  func.func @protopnet_kernel(%arg0: i32, %arg1: memref<256x32xf32, #tpu.memory_space<vmem>>, %arg2: memref<32x128xf32, #tpu.memory_space<vmem>>, %arg3: memref<1x128xf32, #tpu.memory_space<vmem>>, %arg4: memref<128x128xf32, #tpu.memory_space<vmem>>, %arg5: memref<128x128xf32, #tpu.memory_space<vmem>>, %arg6: memref<256x128xf32, #tpu.memory_space<vmem>>, %arg7: memref<256x128xf32, #tpu.memory_space<vmem>>, %arg8: memref<1x1x128xf32, #tpu.memory_space<vmem>>, %arg9: memref<1x1x128xf32, #tpu.memory_space<vmem>>, %arg10: memref<1x1x128xf32, #tpu.memory_space<vmem>>) attributes {dimension_semantics = [#tpu.dimension_semantics<parallel>], iteration_bounds = array<i64: 2>, scalar_prefetch = 0 : i64, scratch_operands = 0 : i64, tpu.core_type = #tpu.core_type<tc>, window_params = [{transform_indices = @transform_0, window_bounds = array<i64: 256, 32>}, {pipeline_mode = #tpu.pipeline_mode<synchronous>, transform_indices = @transform_1, window_bounds = array<i64: 32, 128>}, {pipeline_mode = #tpu.pipeline_mode<synchronous>, transform_indices = @transform_2, window_bounds = array<i64: 1, 128>}, {pipeline_mode = #tpu.pipeline_mode<synchronous>, transform_indices = @transform_3, window_bounds = array<i64: 128, 128>}, {pipeline_mode = #tpu.pipeline_mode<synchronous>, transform_indices = @transform_4, window_bounds = array<i64: 128, 128>}, {transform_indices = @transform_5, window_bounds = array<i64: 256, 128>}, {transform_indices = @transform_6, window_bounds = array<i64: 256, 128>}, {transform_indices = @transform_7, window_bounds = array<i64: 1, 1, 128>}, {transform_indices = @transform_8, window_bounds = array<i64: 1, 1, 128>}, {transform_indices = @transform_9, window_bounds = array<i64: 1, 1, 128>}]} {
    %c0 = arith.constant 0 : index
    %c0_0 = arith.constant 0 : index
    %0 = vector.load %arg1[%c0, %c0_0] : memref<256x32xf32, #tpu.memory_space<vmem>>, vector<256x32xf32>
    %c0_1 = arith.constant 0 : index
    %c0_2 = arith.constant 0 : index
    %1 = vector.load %arg2[%c0_1, %c0_2] : memref<32x128xf32, #tpu.memory_space<vmem>>, vector<32x128xf32>
    %cst = arith.constant dense<0.000000e+00> : vector<256x128xf32>
    %2 = tpu.matmul %0, %1, %cst {dimension_numbers = #tpu.dot_dimension_numbers<[1], [0], [0], [1], [0, 0, 1, 1], [], []>} : vector<256x32xf32>, vector<32x128xf32>, vector<256x128xf32> -> vector<256x128xf32>
    %c0_3 = arith.constant 0 : index
    %c0_4 = arith.constant 0 : index
    %3 = vector.load %arg3[%c0_3, %c0_4] : memref<1x128xf32, #tpu.memory_space<vmem>>, vector<1x128xf32>
    %4 = vector.broadcast %3 : vector<1x128xf32> to vector<256x128xf32>
    %5 = arith.addf %2, %4 : vector<256x128xf32>
    %c0_5 = arith.constant 0 : index
    %c0_6 = arith.constant 0 : index
    %6 = vector.load %arg6[%c0_5, %c0_6] : memref<256x128xf32, #tpu.memory_space<vmem>>, vector<256x128xf32>
    tpu.vector_store %arg6[%c0_5, %c0_6], %5 {strides = array<i32>} : memref<256x128xf32, #tpu.memory_space<vmem>>, vector<256x128xf32>,
    %7 = arith.mulf %5, %5 : vector<256x128xf32>
    %cst_7 = arith.constant dense<0.000000e+00> : vector<256xf32>
    %8 = vector.multi_reduction <add>, %7, %cst_7 [1] : vector<256x128xf32> to vector<256xf32>
    %9 = vector.shape_cast %8 : vector<256xf32> to vector<256x1xf32>
    %c0_8 = arith.constant 0 : index
    %c0_9 = arith.constant 0 : index
    %10 = vector.load %arg4[%c0_8, %c0_9] : memref<128x128xf32, #tpu.memory_space<vmem>>, vector<128x128xf32>
    %cst_10 = arith.constant dense<0.000000e+00> : vector<256x128xf32>
    %11 = tpu.matmul %5, %10, %cst_10 {dimension_numbers = #tpu.dot_dimension_numbers<[1], [0], [0], [1], [0, 0, 1, 1], [], []>} : vector<256x128xf32>, vector<128x128xf32>, vector<256x128xf32> -> vector<256x128xf32>
    %12 = vector.broadcast %9 : vector<256x1xf32> to vector<256x128xf32>
    %13 = arith.addf %12, %11 : vector<256x128xf32>
    %cst_11 = arith.constant 0.000000e+00 : f32
    %14 = vector.broadcast %cst_11 : f32 to vector<256x128xf32>
    %15 = arith.maximumf %13, %14 : vector<256x128xf32>
    %c0_12 = arith.constant 0 : index
    %c0_13 = arith.constant 0 : index
    %16 = vector.load %arg7[%c0_12, %c0_13] : memref<256x128xf32, #tpu.memory_space<vmem>>, vector<256x128xf32>
    tpu.vector_store %arg7[%c0_12, %c0_13], %15 {strides = array<i32>} : memref<256x128xf32, #tpu.memory_space<vmem>>, vector<256x128xf32>,
    %cst_14 = arith.constant dense<0x7F800000> : vector<128xf32>
    %17 = vector.multi_reduction <minimumf>, %15, %cst_14 [0] : vector<256x128xf32> to vector<128xf32>
    %18 = vector.shape_cast %17 : vector<128xf32> to vector<1x128xf32>
    %19 = vector.shape_cast %18 : vector<1x128xf32> to vector<1x1x128xf32>
    %c0_15 = arith.constant 0 : index
    %c0_16 = arith.constant 0 : index
    %c0_17 = arith.constant 0 : index
    %20 = vector.load %arg8[%c0_15, %c0_16, %c0_17] : memref<1x1x128xf32, #tpu.memory_space<vmem>>, vector<1x1x128xf32>
    tpu.vector_store %arg8[%c0_15, %c0_16, %c0_17], %19 {strides = array<i32>} : memref<1x1x128xf32, #tpu.memory_space<vmem>>, vector<1x1x128xf32>,
    %cst_18 = arith.constant 1.000000e+00 : f32
    %21 = vector.broadcast %cst_18 : f32 to vector<1x128xf32>
    %22 = arith.addf %18, %21 : vector<1x128xf32>
    %cst_19 = arith.constant 9.99999974E-5 : f32
    %23 = vector.broadcast %cst_19 : f32 to vector<1x128xf32>
    %24 = arith.addf %18, %23 : vector<1x128xf32>
    %25 = arith.divf %22, %24 : vector<1x128xf32>
    %26 = math.log %25 : vector<1x128xf32>
    %27 = vector.shape_cast %26 : vector<1x128xf32> to vector<1x1x128xf32>
    %c0_20 = arith.constant 0 : index
    %c0_21 = arith.constant 0 : index
    %c0_22 = arith.constant 0 : index
    %28 = vector.load %arg9[%c0_20, %c0_21, %c0_22] : memref<1x1x128xf32, #tpu.memory_space<vmem>>, vector<1x1x128xf32>
    tpu.vector_store %arg9[%c0_20, %c0_21, %c0_22], %27 {strides = array<i32>} : memref<1x1x128xf32, #tpu.memory_space<vmem>>, vector<1x1x128xf32>,
    %c0_23 = arith.constant 0 : index
    %c0_24 = arith.constant 0 : index
    %29 = vector.load %arg5[%c0_23, %c0_24] : memref<128x128xf32, #tpu.memory_space<vmem>>, vector<128x128xf32>
    %cst_25 = arith.constant dense<0.000000e+00> : vector<1x128xf32>
    %30 = tpu.matmul %26, %29, %cst_25 {dimension_numbers = #tpu.dot_dimension_numbers<[1], [0], [0], [1], [0, 0, 1, 1], [], []>} : vector<1x128xf32>, vector<128x128xf32>, vector<1x128xf32> -> vector<1x128xf32>
    %31 = vector.shape_cast %30 : vector<1x128xf32> to vector<1x1x128xf32>
    %c0_26 = arith.constant 0 : index
    %c0_27 = arith.constant 0 : index
    %c0_28 = arith.constant 0 : index
    %32 = vector.load %arg10[%c0_26, %c0_27, %c0_28] : memref<1x1x128xf32, #tpu.memory_space<vmem>>, vector<1x1x128xf32>
    tpu.vector_store %arg10[%c0_26, %c0_27, %c0_28], %31 {strides = array<i32>} : memref<1x1x128xf32, #tpu.memory_space<vmem>>, vector<1x1x128xf32>,
    return
  }
  func.func @transform_0(%arg0: i32) -> (i32, i32) {
    %c0_i32 = arith.constant 0 : i32
    %c0_i32_0 = arith.constant 0 : i32
    return %arg0, %c0_i32 : i32, i32
  }
  func.func @transform_1(%arg0: i32) -> (i32, i32) {
    %c0_i32 = arith.constant 0 : i32
    %c0_i32_0 = arith.constant 0 : i32
    %c0_i32_1 = arith.constant 0 : i32
    return %c0_i32, %c0_i32_0 : i32, i32
  }
  func.func @transform_2(%arg0: i32) -> (i32, i32) {
    %c0_i32 = arith.constant 0 : i32
    %c0_i32_0 = arith.constant 0 : i32
    %c0_i32_1 = arith.constant 0 : i32
    return %c0_i32, %c0_i32_0 : i32, i32
  }
  func.func @transform_3(%arg0: i32) -> (i32, i32) {
    %c0_i32 = arith.constant 0 : i32
    %c0_i32_0 = arith.constant 0 : i32
    %c0_i32_1 = arith.constant 0 : i32
    return %c0_i32, %c0_i32_0 : i32, i32
  }
  func.func @transform_4(%arg0: i32) -> (i32, i32) {
    %c0_i32 = arith.constant 0 : i32
    %c0_i32_0 = arith.constant 0 : i32
    %c0_i32_1 = arith.constant 0 : i32
    return %c0_i32, %c0_i32_0 : i32, i32
  }
  func.func @transform_5(%arg0: i32) -> (i32, i32) {
    %c0_i32 = arith.constant 0 : i32
    %c0_i32_0 = arith.constant 0 : i32
    return %arg0, %c0_i32 : i32, i32
  }
  func.func @transform_6(%arg0: i32) -> (i32, i32) {
    %c0_i32 = arith.constant 0 : i32
    %c0_i32_0 = arith.constant 0 : i32
    return %arg0, %c0_i32 : i32, i32
  }
  func.func @transform_7(%arg0: i32) -> (i32, i32, i32) {
    %c0_i32 = arith.constant 0 : i32
    %c0_i32_0 = arith.constant 0 : i32
    %c0_i32_1 = arith.constant 0 : i32
    return %arg0, %c0_i32, %c0_i32_0 : i32, i32, i32
  }
  func.func @transform_8(%arg0: i32) -> (i32, i32, i32) {
    %c0_i32 = arith.constant 0 : i32
    %c0_i32_0 = arith.constant 0 : i32
    %c0_i32_1 = arith.constant 0 : i32
    return %arg0, %c0_i32, %c0_i32_0 : i32, i32, i32
  }
  func.func @transform_9(%arg0: i32) -> (i32, i32, i32) {
    %c0_i32 = arith.constant 0 : i32
    %c0_i32_0 = arith.constant 0 : i32
    %c0_i32_1 = arith.constant 0 : i32
    return %arg0, %c0_i32, %c0_i32_0 : i32, i32, i32
  }
}

</mosaic_0001>

<bundles_post_ra>
// kernel: protopnet_forward.1
= control target key start
LH: loop header
LB: loop body
LE: loop exit
PB: predicated region body
PF: predicated region fallthrough
CT: control target
= control target key end

     0   :  { %s2642_s0 = inlined_call_operand.vmem [shape: f32[512,32], index: 0, kind: input, shape index: {}]   ;;  %s2643_s1 = inlined_call_operand.vmem [shape: f32[32,128], index: 1, kind: input, shape index: {}]   ;;  %s2644_s2 = inlined_call_operand.vmem [shape: f32[1,128], index: 2, kind: input, shape index: {}]   ;;  %s2645_s3 = inlined_call_operand.vmem [shape: f32[128,128], index: 3, kind: input, shape index: {}]   ;;  %s2646_s4 = inlined_call_operand.vmem [shape: f32[128,128], index: 4, kind: input, shape index: {}]   ;;  %s2647_s5 = inlined_call_operand.vmem [shape: f32[512,128], index: 5, kind: output, shape index: {0}]   ;;  %s2648_s6 = inlined_call_operand.vmem [shape: f32[512,128], index: 6, kind: output, shape index: {1}]   ;;  %s2649_s7 = inlined_call_operand.hbm [shape: f32[2,1,128], index: 7, kind: output, shape index: {2}]   ;;  %s2650_s8 = inlined_call_operand.hbm [shape: f32[2,1,128], index: 8, kind: output, shape index: {3}]   ;;  %s2651_s9 = inlined_call_operand.hbm [shape: f32[2,1,128], index: 9, kind: output, shape index: {4}]  }
   0x1   :  { %2654 = sst [smem:[#allocation9_spill]] %s2642_s0 }
   0x2   :  { %15 = vsyncpa [#allocation3], 0 }
   0x3   :  { %17 = vsyncpa [#allocation3 + $0x1], 0 }
   0x4   :  { %18 = vsyncpa [#allocation5], 0 }
   0x5   :  { %20 = vsyncpa [#allocation5 + $0x1], 0  ;;  %s2179_s30 = smov 0   ;;  %s2181_s10 = smov 0  }
   0x6   :  { %s2183_s11 = smov 0   ;;  %s2185_s12 = smov 0  }
   0x7 LB: > { %s2200_s13 = sadd.s32 4294967295, %s2121_s12   ;;  %s2652_s14 = sadd.s32 4294967294, %s2121_s12   ;;  %s2121_s12 = sphi %s2185_s12, %s2663_s12   ;;  %s2117_s11 = sphi %s2183_s11, %s2662_s11   ;;  %s2113_s10 = sphi %s2181_s10, %s2661_s10   ;;  %s2109_s30 = sphi %s2179_s30, %s2660_s30  }
   0x8   : > { %s2204_s15 = sadd.s32 1, %s2121_s12   ;;  %s195_s16 = sadd.s32 1, %s2117_s11 }
   0x9   : > { %s192_s17 = ssub.s32 %s2121_s12, %s2204_s15  ;;  %p205_p0 = scmp.ne.s32.totalorder %s2117_s11, %s2113_s10 }
   0xa   : > { %p193_p1 = scmp.eq.s32.totalorder %s192_s17, 0  ;;  %p206_p2 = scmp.eq.s32.totalorder %s2200_s13, 1 }
   0xb   : > { %p211_p3 = scmp.ne.s32.totalorder %s2113_s10, %s2109_s30  ;;  %p212_p4 = scmp.eq.s32.totalorder %s2652_s14, 1 }
   0xc   : > { %s2217_s18 = scalar_select %p193_p1, %s2117_s11, %s195_s16  }
   0xd   : > { %p2219_p5 = por %p206_p2, %p205_p0  ;;  %p2223_p6 = por %p212_p4, %p211_p3 }
   0xe   : > { %p1562_p7 = scmp.ge.s32.totalorder %s2121_s12, 1  ;;  %p303_p8 = scmp.lt.s32.totalorder %s2121_s12, 3 }
  0x10   : > { %p304_p9 = pnand %p1562_p7, %p303_p8 }
  0x11   : > { %v406_v0 = vld [vmem:[%s2643_s1] sm:$0xff] (!%p304_p9)  ;;  %v407_v1 = vld [vmem:[%s2643_s1 + $0x8] sm:$0xff] (!%p304_p9)  ;;  %v408_v2 = vld [vmem:[%s2643_s1 + $0x10] sm:$0xff] (!%p304_p9)  ;;  %s1563_s27 = sshll.u32 (!%p304_p9), %s2200_s13, 5  ;;  %vm417_vm0 = vcmask (!%p304_p9), 261120   ;;  %s2657_s0 = sld [smem:[#allocation9_spill]] (!%p304_p9) }
  0x12   : > { %307 = sbr.rel (%p304_p9) target bundleno = 795 (0x31b), region = 40  ;;  %v1879_v3 = vpack.c.bf16 (!%p304_p9), %v407_v1, %v406_v0  ;;  %v409_v4 = vld [vmem:[%s2643_s1 + $0x18] sm:$0xff] (!%p304_p9)  ;;  %p357_p10 = scmp.lt.s32.totalorder (!%p304_p9), %s1563_s27, 63  ;;  %v867_v5 = vld [vmem:[%s2645_s3] sm:$0xff] (!%p304_p9)  ;;  %v868_v6 = vld [vmem:[%s2645_s3 + $0x8] sm:$0xff] (!%p304_p9)  ;;  %vm2124_vm1 = vmmov (!%p304_p9), 0  }
  0x13   : > { %v1883_v7 = vpack.c.bf16 (!%p304_p9), %v409_v4, %v408_v2  ;;  %v1887_v8 = vpack.c.bf16 (!%p304_p9), %v868_v6, %v867_v5  ;;  %v869_v9 = vld [vmem:[%s2645_s3 + $0x10] sm:$0xff] (!%p304_p9)  ;;  %v870_v10 = vld [vmem:[%s2645_s3 + $0x18] sm:$0xff] (!%p304_p9)  ;;  %v871_v12 = vld [vmem:[%s2645_s3 + $0x20] sm:$0xff] (!%p304_p9)  ;;  %s1350_s29 = sand.u32 (!%p304_p9), 1, %s2200_s13  }
  0x14   : > { %1880 = vmatprep.subr.bf16.mxu0 (!%p304_p9), %v1879_v3  ;;  %v1891_v11 = vpack.c.bf16 (!%p304_p9), %v870_v10, %v869_v9  ;;  %v872_v13 = vld [vmem:[%s2645_s3 + $0x28] sm:$0xff] (!%p304_p9)  ;;  %v873_v16 = vld [vmem:[%s2645_s3 + $0x30] sm:$0xff] (!%p304_p9)  ;;  %v874_v17 = vld [vmem:[%s2645_s3 + $0x38] sm:$0xff] (!%p304_p9) }
  0x15   : > { %1882 = vmatpush3.bf16.msra.mxu0 (!%p304_p9), %v1879_v3  ;;  %1888 = vmatprep.subr.bf16.mxu1 (!%p304_p9), %v1887_v8  ;;  %v1895_v14 = vpack.c.bf16 (!%p304_p9), %v872_v13, %v871_v12  ;;  %v1899_v20 = vpack.c.bf16 (!%p304_p9), %v874_v17, %v873_v16  ;;  %v875_v21 = vld [vmem:[%s2645_s3 + $0x40] sm:$0xff] (!%p304_p9)  ;;  %v876_v22 = vld [vmem:[%s2645_s3 + $0x48] sm:$0xff] (!%p304_p9)  ;;  %v877_v26 = vld [vmem:[%s2645_s3 + $0x50] sm:$0xff] (!%p304_p9) }
  0x16   : > { %1884 = vmatprep.subr.bf16.mxu0 (!%p304_p9), %v1883_v7  ;;  %1890 = vmatpush3.bf16.msra.mxu1 (!%p304_p9), %v1887_v8  ;;  %v1903_v25 = vpack.c.bf16 (!%p304_p9), %v876_v22, %v875_v21  ;;  %v878_v27 = vld [vmem:[%s2645_s3 + $0x58] sm:$0xff] (!%p304_p9)  ;;  %v879_v31 = vld [vmem:[%s2645_s3 + $0x60] sm:$0xff] (!%p304_p9)  ;;  %v880_v32 = vld [vmem:[%s2645_s3 + $0x68] sm:$0xff] (!%p304_p9) }
  0x17   : > { %1892 = vmatprep.subr.bf16.mxu1 (!%p304_p9), %v1891_v11  ;;  %v1907_v30 = vpack.c.bf16 (!%p304_p9), %v878_v27, %v877_v26  ;;  %v1911_v35 = vpack.c.bf16 (!%p304_p9), %v880_v32, %v879_v31  ;;  %v881_v59 = vld [vmem:[%s2645_s3 + $0x70] sm:$0xff] (!%p304_p9)  ;;  %v882_v60 = vld [vmem:[%s2645_s3 + $0x78] sm:$0xff] (!%p304_p9)  ;;  %v2365_v62 = vld [vmem:[%s2644_s2] ss:$0 sm:$0xff] (!%p304_p9) }
  0x18   : > { %v1915_v61 = vpack.c.bf16 (!%p304_p9), %v882_v60, %v881_v59 }
  0x19   : > { %s2665_s27 = smov (!%p357_p10, %s1563_s27), 63  ;;  %1886 = vmatpush3.bf16.msra.mxu0 %v1883_v7 }
  0x1a   : > { %s2260_s21 = sshll.u32 %s2665_s27, 3  ;;  %1894 = vmatpush3.bf16.msra.mxu1 %v1891_v11 }
  0x1b   : > { %s2266_s24 = scalar_lea.vmem %s2657_s0, %s2260_s21  ;;  %1896 = vmatprep.subr.bf16.mxu1 %v1895_v14  ;;  %s2371_s16 = scalar_lea.vmem %s2647_s5, %s2260_s21 }
  0x1c   : > { %v374_v15 = vld [vmem:[%s2266_s24] sm:$0xff]  ;;  %v375_v18 = vld [vmem:[%s2266_s24 + $0x8] sm:$0xff]  ;;  %v376_v19 = vld [vmem:[%s2266_s24 + $0x10] sm:$0xff]  ;;  %s2489_s26 = scalar_lea.vmem %s2648_s6, %s2260_s21  ;;  %s2524_s21 = sand.u32 1, %s2113_s10  }
  0x1d   : > { %1716 = vmatprep.mubr.msk.f32.mxu0 %vm417_vm0, %v374_v15  ;;  %v377_v23 = vld [vmem:[%s2266_s24 + $0x18] sm:$0xff]  ;;  %v378_v24 = vld [vmem:[%s2266_s24 + $0x20] sm:$0xff]  ;;  %v379_v28 = vld [vmem:[%s2266_s24 + $0x28] sm:$0xff]  ;;  %s2653_s27 = scalar_lea.vmem [#allocation2], %s2524_s21  ;;  %s349_s28 = scalar_lea.vmem [#allocation4], %s2524_s21 }
  0x1e   : > { %1717 = vmatmul.mubr.msk.f32.vlgmr.msra.gmra.mrb[0].mxu0 %vm417_vm0, %v375_v18  ;;  %1898 = vmatpush3.bf16.msra.mxu1 %v1895_v14  ;;  %v380_v29 = vld [vmem:[%s2266_s24 + $0x30] sm:$0xff]  ;;  %v381_v33 = vld [vmem:[%s2266_s24 + $0x38] sm:$0xff]  ;;  %v382_v34 = vld [vmem:[%s2266_s24 + $0x40] sm:$0xff]  ;;  %s1388_s23 = sshll.u32 %s349_s28, 4  ;;  %s2540_s23 = int_to_ptr.vmem [resolvable:$true] %s1388_s23 }
  0x1f   : > { %1719 = vmatprep.mubr.msk.f32.mxu0 %vm417_vm0, %v376_v19  ;;  %1900 = vmatprep.subr.bf16.mxu1 %v1899_v20  ;;  %v383_v36 = vld [vmem:[%s2266_s24 + $0x48] sm:$0xff]  ;;  %v384_v37 = vld [vmem:[%s2266_s24 + $0x50] sm:$0xff]  ;;  %v385_v38 = vld [vmem:[%s2266_s24 + $0x58] sm:$0xff] }
  0x20   : > { %v386_v39 = vld [vmem:[%s2266_s24 + $0x60] sm:$0xff]  ;;  %v387_v40 = vld [vmem:[%s2266_s24 + $0x68] sm:$0xff]  ;;  %v388_v41 = vld [vmem:[%s2266_s24 + $0x70] sm:$0xff] }
  0x21   : > { %v389_v42 = vld [vmem:[%s2266_s24 + $0x78] sm:$0xff]  ;;  %v390_v43 = vld [vmem:[%s2266_s24 + $0x80] sm:$0xff]  ;;  %v391_v44 = vld [vmem:[%s2266_s24 + $0x88] sm:$0xff] }
  0x22   : > { %1720 = vmatmul.mubr.msk.f32.gmra.mrb[2].mxu0 %vm417_vm0, %v377_v23  ;;  %1902 = vmatpush3.bf16.msra.mxu1 %v1899_v20  ;;  %v392_v45 = vld [vmem:[%s2266_s24 + $0x90] sm:$0xff]  ;;  %v393_v46 = vld [vmem:[%s2266_s24 + $0x98] sm:$0xff]  ;;  %v394_v47 = vld [vmem:[%s2266_s24 + $0xa0] sm:$0xff] }
  0x23   : > { %1722 = vmatprep.mubr.msk.f32.mxu0 %vm417_vm0, %v378_v24  ;;  %1904 = vmatprep.subr.bf16.mxu1 %v1903_v25  ;;  %v395_v48 = vld [vmem:[%s2266_s24 + $0xa8] sm:$0xff]  ;;  %v396_v49 = vld [vmem:[%s2266_s24 + $0xb0] sm:$0xff]  ;;  %v397_v50 = vld [vmem:[%s2266_s24 + $0xb8] sm:$0xff] }
  0x24   : > { %v398_v51 = vld [vmem:[%s2266_s24 + $0xc0] sm:$0xff]  ;;  %v399_v52 = vld [vmem:[%s2266_s24 + $0xc8] sm:$0xff]  ;;  %v400_v53 = vld [vmem:[%s2266_s24 + $0xd0] sm:$0xff] }
  0x25   : > { %v401_v54 = vld [vmem:[%s2266_s24 + $0xd8] sm:$0xff]  ;;  %v402_v55 = vld [vmem:[%s2266_s24 + $0xe0] sm:$0xff]  ;;  %v403_v56 = vld [vmem:[%s2266_s24 + $0xe8] sm:$0xff] }
  0x26   : > { %1723 = vmatmul.mubr.msk.f32.gmra.mrb[4].mxu0 %vm417_vm0, %v379_v28  ;;  %1906 = vmatpush3.bf16.msra.mxu1 %v1903_v25  ;;  %v404_v57 = vld [vmem:[%s2266_s24 + $0xf0] sm:$0xff]  ;;  %v405_v58 = vld [vmem:[%s2266_s24 + $0xf8] sm:$0xff]  ;;  %s2532_s24 = sshll.u32 %s2200_s13, 4  ;;  %s2548_s13 = scalar_lea.sflag [#allocation5], %s1350_s29 }
  0x27   : > { %1725 = vmatprep.mubr.msk.f32.mxu0 %vm417_vm0, %v380_v29  ;;  %1908 = vmatprep.subr.bf16.mxu1 %v1907_v30  ;;  %s2538_s22 = scalar_lea.hbm %s2650_s8, %s2532_s24  ;;  %s2546_s14 = scalar_lea.hbm %s2649_s7, %s2532_s24 }
  0x2a   : > { %1726 = vmatmul.mubr.msk.f32.gmra.mrb[6].mxu0 %vm417_vm0, %v381_v33  ;;  %1910 = vmatpush3.bf16.msra.mxu1 %v1907_v30 }
  0x2b   : > { %1728 = vmatprep.mubr.msk.f32.mxu0 %vm417_vm0, %v382_v34  ;;  %1912 = vmatprep.subr.bf16.mxu1 %v1911_v35 }
  0x2e   : > { %1729 = vmatmul.mubr.msk.f32.gmra.mrb[8].mxu0 %vm417_vm0, %v383_v36  ;;  %1914 = vmatpush3.bf16.msra.mxu1 %v1911_v35 }
  0x2f   : > { %1731 = vmatprep.mubr.msk.f32.mxu0 %vm417_vm0, %v384_v37  ;;  %1916 = vmatprep.subr.bf16.mxu1 %v1915_v61 }
  0x32   : > { %1732 = vmatmul.mubr.msk.f32.gmra.mrb[10].mxu0 %vm417_vm0, %v385_v38  ;;  %1918 = vmatpush3.bf16.msra.mxu1 %v1915_v61 }
  0x33   : > { %1734 = vmatprep.mubr.msk.f32.mxu0 %vm417_vm0, %v386_v39 }
  0x36   : > { %1735 = vmatmul.mubr.msk.f32.gmra.mrb[12].mxu0 %vm417_vm0, %v387_v40 }
  0x37   : > { %1737 = vmatprep.mubr.msk.f32.mxu0 %vm417_vm0, %v388_v41 }
  0x3a   : > { %1738 = vmatmul.mubr.msk.f32.gmra.mrb[14].mxu0 %vm417_vm0, %v389_v42 }
  0x3b   : > { %1740 = vmatprep.mubr.msk.f32.mxu0 %vm417_vm0, %v390_v43 }
  0x3e   : > { %1741 = vmatmul.mubr.msk.f32.gmra.mrb[16].mxu0 %vm417_vm0, %v391_v44 }
  0x3f   : > { %1743 = vmatprep.mubr.msk.f32.mxu0 %vm417_vm0, %v392_v45 }
  0x42   : > { %1744 = vmatmul.mubr.msk.f32.gmra.mrb[18].mxu0 %vm417_vm0, %v393_v46 }
  0x43   : > { %1746 = vmatprep.mubr.msk.f32.mxu0 %vm417_vm0, %v394_v47 }
  0x46   : > { %1747 = vmatmul.mubr.msk.f32.gmra.mrb[20].mxu0 %vm417_vm0, %v395_v48 }
  0x47   : > { %1749 = vmatprep.mubr.msk.f32.mxu0 %vm417_vm0, %v396_v49 }
  0x4a   : > { %1750 = vmatmul.mubr.msk.f32.gmra.mrb[22].mxu0 %vm417_vm0, %v397_v50 }
  0x4b   : > { %1752 = vmatprep.mubr.msk.f32.mxu0 %vm417_vm0, %v398_v51 }
  0x4e   : > { %1753 = vmatmul.mubr.msk.f32.gmra.mrb[24].mxu0 %vm417_vm0, %v399_v52 }
  0x4f   : > { %1755 = vmatprep.mubr.msk.f32.mxu0 %vm417_vm0, %v400_v53 }
  0x52   : > { %1756 = vmatmul.mubr.msk.f32.gmra.mrb[26].mxu0 %vm417_vm0, %v401_v54 }
  0x53   : > { %1758 = vmatprep.mubr.msk.f32.mxu0 %vm417_vm0, %v402_v55 }
  0x56   : > { %1759 = vmatmul.mubr.msk.f32.gmra.mrb[28].mxu0 %vm417_vm0, %v403_v56 }
  0x57   : > { %1761 = vmatprep.mubr.msk.f32.mxu0 %vm417_vm0, %v404_v57 }
  0x5a   : > { %1762 = vmatmul.mubr.msk.f32.gmra.mrb[30].mxu0 %vm417_vm0, %v405_v58 }
  0xf1   : > { %v1718_v63 = vpop.f32.mrb[0].mxu0 }
  0xf2   : > { %v586_v0 = vadd.f32 %v1718_v63, %v2365_v62  ;;  %v580_v1 = vpop.f32.mrb[1].mxu0 }
  0xf3   : > { %v581_v2 = vadd.f32 %v2365_v62, %v580_v1 }
  0xf4   : > { %740 = vst [vmem:[%s2371_s16 + $0x8] sm:$0xff] %v586_v0  ;;  %v772_v3 = vmul.f32 %v586_v0, %v586_v0 }
  0xf5   : > { %739 = vst [vmem:[%s2371_s16] sm:$0xff] %v581_v2  ;;  %v1721_v4 = vpop.f32.mrb[2].mxu0  ;;  %1796 = vmatprep.mubr.f32.mxu1 %v581_v2  ;;  %v771_v10 = vmul.f32 %v581_v2, %v581_v2 }
  0xf6   : > { %v596_v5 = vadd.f32 %v1721_v4, %v2365_v62  ;;  %805 = vadd.xlane.f32.xlu0 %v772_v3  ;;  %v590_v6 = vpop.f32.mrb[3].mxu0  ;;  %1797 = vmatmul.mubr.f32.vlgmr.msra.gmra.mrb[0].mxu1 %v586_v0 }
  0xf7   : > { %v591_v7 = vadd.f32 %v2365_v62, %v590_v6 }
  0xf8   : > { %742 = vst [vmem:[%s2371_s16 + $0x18] sm:$0xff] %v596_v5  ;;  %v774_v8 = vmul.f32 %v596_v5, %v596_v5 }
  0xf9   : > { %741 = vst [vmem:[%s2371_s16 + $0x10] sm:$0xff] %v591_v7  ;;  %v1724_v9 = vpop.f32.mrb[4].mxu0  ;;  %1799 = vmatprep.mubr.f32.mxu1 %v591_v7  ;;  %v773_v14 = vmul.f32 %v591_v7, %v591_v7 }
  0xfa   : > { %v606_v11 = vadd.f32 %v1724_v9, %v2365_v62  ;;  %809 = vadd.xlane.f32.xlu1 %v774_v8  ;;  %v600_v12 = vpop.f32.mrb[5].mxu0  ;;  %1800 = vmatmul.mubr.f32.gmra.mrb[2].mxu1 %v596_v5 }
  0xfb   : > { %v601_v13 = vadd.f32 %v2365_v62, %v600_v12  ;;  %803 = vadd.xlane.f32.xlu0 %v771_v10 }
  0xfc   : > { %744 = vst [vmem:[%s2371_s16 + $0x28] sm:$0xff] %v606_v11  ;;  %v776_v20 = vmul.f32 %v606_v11, %v606_v11 }
  0xfd   : > { %743 = vst [vmem:[%s2371_s16 + $0x20] sm:$0xff] %v601_v13  ;;  %v1727_v15 = vpop.f32.mrb[6].mxu0  ;;  %1802 = vmatprep.mubr.f32.mxu1 %v601_v13  ;;  %v775_v16 = vmul.f32 %v601_v13, %v601_v13 }
  0xfe   : > { %v616_v17 = vadd.f32 %v1727_v15, %v2365_v62  ;;  %v610_v18 = vpop.f32.mrb[7].mxu0  ;;  %807 = vadd.xlane.f32.xlu1 %v773_v14  ;;  %1803 = vmatmul.mubr.f32.gmra.mrb[4].mxu1 %v606_v11 }
  0xff   : > { %v611_v19 = vadd.f32 %v2365_v62, %v610_v18  ;;  %811 = vadd.xlane.f32.xlu0 %v775_v16 }
 0x100   : > { %746 = vst [vmem:[%s2371_s16 + $0x38] sm:$0xff] %v616_v17  ;;  %v778_v26 = vmul.f32 %v616_v17, %v616_v17 }
 0x101   : > { %745 = vst [vmem:[%s2371_s16 + $0x30] sm:$0xff] %v611_v19  ;;  %v1730_v21 = vpop.f32.mrb[8].mxu0  ;;  %1805 = vmatprep.mubr.f32.mxu1 %v611_v19  ;;  %v777_v22 = vmul.f32 %v611_v19, %v611_v19 }
 0x102   : > { %v626_v23 = vadd.f32 %v1730_v21, %v2365_v62  ;;  %v620_v24 = vpop.f32.mrb[9].mxu0  ;;  %813 = vadd.xlane.f32.xlu1 %v776_v20  ;;  %1806 = vmatmul.mubr.f32.gmra.mrb[6].mxu1 %v616_v17 }
 0x103   : > { %v621_v25 = vadd.f32 %v2365_v62, %v620_v24  ;;  %815 = vadd.xlane.f32.xlu0 %v777_v22 }
 0x104   : > { %748 = vst [vmem:[%s2371_s16 + $0x48] sm:$0xff] %v626_v23  ;;  %v780_v32 = vmul.f32 %v626_v23, %v626_v23 }
 0x105   : > { %747 = vst [vmem:[%s2371_s16 + $0x40] sm:$0xff] %v621_v25  ;;  %v1733_v27 = vpop.f32.mrb[10].mxu0  ;;  %1808 = vmatprep.mubr.f32.mxu1 %v621_v25  ;;  %v779_v28 = vmul.f32 %v621_v25, %v621_v25 }
 0x106   : > { %v636_v29 = vadd.f32 %v1733_v27, %v2365_v62  ;;  %v630_v30 = vpop.f32.mrb[11].mxu0  ;;  %817 = vadd.xlane.f32.xlu1 %v778_v26  ;;  %1809 = vmatmul.mubr.f32.gmra.mrb[8].mxu1 %v626_v23 }
 0x107   : > { %v631_v31 = vadd.f32 %v2365_v62, %v630_v30  ;;  %819 = vadd.xlane.f32.xlu0 %v779_v28 }
 0x108   : > { %750 = vst [vmem:[%s2371_s16 + $0x58] sm:$0xff] %v636_v29  ;;  %v782_v38 = vmul.f32 %v636_v29, %v636_v29 }
 0x109   : > { %749 = vst [vmem:[%s2371_s16 + $0x50] sm:$0xff] %v631_v31  ;;  %v1736_v33 = vpop.f32.mrb[12].mxu0  ;;  %1811 = vmatprep.mubr.f32.mxu1 %v631_v31  ;;  %v781_v34 = vmul.f32 %v631_v31, %v631_v31 }
 0x10a   : > { %v646_v35 = vadd.f32 %v1736_v33, %v2365_v62  ;;  %v640_v36 = vpop.f32.mrb[13].mxu0  ;;  %821 = vadd.xlane.f32.xlu1 %v780_v32  ;;  %1812 = vmatmul.mubr.f32.gmra.mrb[10].mxu1 %v636_v29  ;;  %v2123_v32 = vmov 0.0|0.0   ;;  %v1249_v33 = vld [vmem:[%s2646_s4] sm:$0xff] }
 0x10b   : > { %v641_v37 = vadd.f32 %v2365_v62, %v640_v36  ;;  %823 = vadd.xlane.f32.xlu0 %v781_v34  ;;  %1919 = vmatprep.subr.bf16.mxu0 %v2123_v32  ;;  %v1252_v36 = vld [vmem:[%s2646_s4 + $0x18] sm:$0xff] }
 0x10c   : > { %752 = vst [vmem:[%s2371_s16 + $0x68] sm:$0xff] %v646_v35  ;;  %v784_v44 = vmul.f32 %v646_v35, %v646_v35 }
 0x10d   : > { %751 = vst [vmem:[%s2371_s16 + $0x60] sm:$0xff] %v641_v37  ;;  %v1739_v39 = vpop.f32.mrb[14].mxu0  ;;  %1814 = vmatprep.mubr.f32.mxu1 %v641_v37  ;;  %v783_v40 = vmul.f32 %v641_v37, %v641_v37 }
 0x10e   : > { %v656_v41 = vadd.f32 %v1739_v39, %v2365_v62  ;;  %v650_v42 = vpop.f32.mrb[15].mxu0  ;;  %825 = vadd.xlane.f32.xlu1 %v782_v38  ;;  %1815 = vmatmul.mubr.f32.gmra.mrb[12].mxu1 %v646_v35  ;;  %v1251_v35 = vld [vmem:[%s2646_s4 + $0x10] sm:$0xff]  ;;  %v1253_v38 = vld [vmem:[%s2646_s4 + $0x20] sm:$0xff]  ;;  %v1254_v39 = vld [vmem:[%s2646_s4 + $0x28] sm:$0xff] }
 0x10f   : > { %v651_v43 = vadd.f32 %v2365_v62, %v650_v42  ;;  %827 = vadd.xlane.f32.xlu0 %v783_v40  ;;  %v1923_v37 = vpack.c.bf16 %v1252_v36, %v1251_v35  ;;  %v1255_v40 = vld [vmem:[%s2646_s4 + $0x30] sm:$0xff]  ;;  %v1256_v42 = vld [vmem:[%s2646_s4 + $0x38] sm:$0xff] }
 0x110   : > { %754 = vst [vmem:[%s2371_s16 + $0x78] sm:$0xff] %v656_v41  ;;  %v786_v50 = vmul.f32 %v656_v41, %v656_v41 }
 0x111   : > { %753 = vst [vmem:[%s2371_s16 + $0x70] sm:$0xff] %v651_v43  ;;  %v1742_v45 = vpop.f32.mrb[16].mxu0  ;;  %1817 = vmatprep.mubr.f32.mxu1 %v651_v43  ;;  %v785_v46 = vmul.f32 %v651_v43, %v651_v43  ;;  %v2125_v43 = vmov 0.0  }
 0x112   : > { %v666_v47 = vadd.f32 %v1742_v45, %v2365_v62  ;;  %v660_v48 = vpop.f32.mrb[17].mxu0  ;;  %829 = vadd.xlane.f32.xlu1 %v784_v44  ;;  %1818 = vmatmul.mubr.f32.gmra.mrb[14].mxu1 %v656_v41  ;;  %v1926_v41 = vpack.c.bf16 %v1254_v39, %v1253_v38  ;;  %v1929_v44 = vpack.c.bf16 %v1256_v42, %v1255_v40  ;;  %v1257_v45 = vld [vmem:[%s2646_s4 + $0x40] sm:$0xff] }
 0x113   : > { %v661_v49 = vadd.f32 %v2365_v62, %v660_v48  ;;  %831 = vadd.xlane.f32.xlu0 %v785_v46  ;;  %1876 = vmatprep.mubr.msk.f32.mxu0 %vm2124_vm1, %v2125_v43  ;;  %v1258_v46 = vld [vmem:[%s2646_s4 + $0x48] sm:$0xff]  ;;  %v1259_v48 = vld [vmem:[%s2646_s4 + $0x50] sm:$0xff] }
 0x114   : > { %756 = vst [vmem:[%s2371_s16 + $0x88] sm:$0xff] %v666_v47  ;;  %v788_v56 = vmul.f32 %v666_v47, %v666_v47 }
 0x115   : > { %755 = vst [vmem:[%s2371_s16 + $0x80] sm:$0xff] %v661_v49  ;;  %v1745_v51 = vpop.f32.mrb[18].mxu0  ;;  %1820 = vmatprep.mubr.f32.mxu1 %v661_v49  ;;  %v787_v52 = vmul.f32 %v661_v49, %v661_v49  ;;  %v1260_v49 = vld [vmem:[%s2646_s4 + $0x58] sm:$0xff] }
 0x116   : > { %v676_v53 = vadd.f32 %v1745_v51, %v2365_v62  ;;  %v670_v54 = vpop.f32.mrb[19].mxu0  ;;  %833 = vadd.xlane.f32.xlu1 %v786_v50  ;;  %1821 = vmatmul.mubr.f32.gmra.mrb[16].mxu1 %v666_v47  ;;  %v1932_v47 = vpack.c.bf16 %v1258_v46, %v1257_v45  ;;  %v1935_v50 = vpack.c.bf16 %v1260_v49, %v1259_v48 }
 0x117   : > { %v671_v55 = vadd.f32 %v2365_v62, %v670_v54  ;;  %835 = vadd.xlane.f32.xlu0 %v787_v52  ;;  %v1261_v52 = vld [vmem:[%s2646_s4 + $0x60] sm:$0xff] }
 0x118   : > { %758 = vst [vmem:[%s2371_s16 + $0x98] sm:$0xff] %v676_v53  ;;  %v790_v63 = vmul.f32 %v676_v53, %v676_v53 }
 0x119   : > { %757 = vst [vmem:[%s2371_s16 + $0x90] sm:$0xff] %v671_v55  ;;  %v1748_v57 = vpop.f32.mrb[20].mxu0  ;;  %1823 = vmatprep.mubr.f32.mxu1 %v671_v55  ;;  %v789_v58 = vmul.f32 %v671_v55, %v671_v55 }
 0x11a   : > { %v686_v59 = vadd.f32 %v1748_v57, %v2365_v62  ;;  %v680_v60 = vpop.f32.mrb[21].mxu0  ;;  %837 = vadd.xlane.f32.xlu1 %v788_v56  ;;  %1824 = vmatmul.mubr.f32.gmra.mrb[18].mxu1 %v676_v53  ;;  %v1262_v53 = vld [vmem:[%s2646_s4 + $0x68] sm:$0xff]  ;;  %v1263_v56 = vld [vmem:[%s2646_s4 + $0x70] sm:$0xff]  ;;  %v1264_v57 = vld [vmem:[%s2646_s4 + $0x78] sm:$0xff] }
 0x11b   : > { %v681_v61 = vadd.f32 %v2365_v62, %v680_v60  ;;  %839 = vadd.xlane.f32.xlu0 %v789_v58  ;;  %v1938_v55 = vpack.c.bf16 %v1262_v53, %v1261_v52  ;;  %v1941_v60 = vpack.c.bf16 %v1264_v57, %v1263_v56 }
 0x11c   : > { %760 = vst [vmem:[%s2371_s16 + $0xa8] sm:$0xff] %v686_v59  ;;  %v792_v5 = vmul.f32 %v686_v59, %v686_v59 }
 0x11d   : > { %759 = vst [vmem:[%s2371_s16 + $0xa0] sm:$0xff] %v681_v61  ;;  %v1751_v0 = vpop.f32.mrb[22].mxu0  ;;  %1826 = vmatprep.mubr.f32.mxu1 %v681_v61  ;;  %v791_v1 = vmul.f32 %v681_v61, %v681_v61 }
 0x11e   : > { %v696_v2 = vadd.f32 %v1751_v0, %v2365_v62  ;;  %v690_v3 = vpop.f32.mrb[23].mxu0  ;;  %841 = vadd.xlane.f32.xlu1 %v790_v63  ;;  %1827 = vmatmul.mubr.f32.gmra.mrb[20].mxu1 %v686_v59 }
 0x11f   : > { %v691_v4 = vadd.f32 %v2365_v62, %v690_v3  ;;  %843 = vadd.xlane.f32.xlu0 %v791_v1 }
 0x120   : > { %762 = vst [vmem:[%s2371_s16 + $0xb8] sm:$0xff] %v696_v2  ;;  %v794_v11 = vmul.f32 %v696_v2, %v696_v2 }
 0x121   : > { %761 = vst [vmem:[%s2371_s16 + $0xb0] sm:$0xff] %v691_v4  ;;  %v1754_v6 = vpop.f32.mrb[24].mxu0  ;;  %1829 = vmatprep.mubr.f32.mxu1 %v691_v4  ;;  %v793_v7 = vmul.f32 %v691_v4, %v691_v4 }
 0x122   : > { %v706_v8 = vadd.f32 %v1754_v6, %v2365_v62  ;;  %v700_v9 = vpop.f32.mrb[25].mxu0  ;;  %845 = vadd.xlane.f32.xlu1 %v792_v5  ;;  %1830 = vmatmul.mubr.f32.gmra.mrb[22].mxu1 %v696_v2 }
 0x123   : > { %v701_v10 = vadd.f32 %v2365_v62, %v700_v9  ;;  %847 = vadd.xlane.f32.xlu0 %v793_v7 }
 0x124   : > { %764 = vst [vmem:[%s2371_s16 + $0xc8] sm:$0xff] %v706_v8  ;;  %v796_v17 = vmul.f32 %v706_v8, %v706_v8 }
 0x125   : > { %763 = vst [vmem:[%s2371_s16 + $0xc0] sm:$0xff] %v701_v10  ;;  %v1757_v12 = vpop.f32.mrb[26].mxu0  ;;  %1832 = vmatprep.mubr.f32.mxu1 %v701_v10  ;;  %v795_v13 = vmul.f32 %v701_v10, %v701_v10 }
 0x126   : > { %v716_v14 = vadd.f32 %v1757_v12, %v2365_v62  ;;  %v710_v15 = vpop.f32.mrb[27].mxu0  ;;  %849 = vadd.xlane.f32.xlu1 %v794_v11  ;;  %1833 = vmatmul.mubr.f32.gmra.mrb[24].mxu1 %v706_v8 }
 0x127   : > { %v711_v16 = vadd.f32 %v2365_v62, %v710_v15  ;;  %851 = vadd.xlane.f32.xlu0 %v795_v13 }
 0x128   : > { %766 = vst [vmem:[%s2371_s16 + $0xd8] sm:$0xff] %v716_v14  ;;  %v798_v23 = vmul.f32 %v716_v14, %v716_v14 }
 0x129   : > { %765 = vst [vmem:[%s2371_s16 + $0xd0] sm:$0xff] %v711_v16  ;;  %v1760_v18 = vpop.f32.mrb[28].mxu0  ;;  %1835 = vmatprep.mubr.f32.mxu1 %v711_v16  ;;  %v797_v19 = vmul.f32 %v711_v16, %v711_v16 }
 0x12a   : > { %v726_v20 = vadd.f32 %v1760_v18, %v2365_v62  ;;  %v720_v21 = vpop.f32.mrb[29].mxu0  ;;  %853 = vadd.xlane.f32.xlu1 %v796_v17  ;;  %1836 = vmatmul.mubr.f32.gmra.mrb[26].mxu1 %v716_v14 }
 0x12b   : > { %v721_v22 = vadd.f32 %v2365_v62, %v720_v21  ;;  %855 = vadd.xlane.f32.xlu0 %v797_v19 }
 0x12c   : > { %768 = vst [vmem:[%s2371_s16 + $0xe8] sm:$0xff] %v726_v20  ;;  %v800_v29 = vmul.f32 %v726_v20, %v726_v20 }
 0x12d   : > { %767 = vst [vmem:[%s2371_s16 + $0xe0] sm:$0xff] %v721_v22  ;;  %v1763_v24 = vpop.f32.mrb[30].mxu0  ;;  %1838 = vmatprep.mubr.f32.mxu1 %v721_v22  ;;  %v799_v25 = vmul.f32 %v721_v22, %v721_v22 }
 0x12e   : > { %v736_v26 = vadd.f32 %v1763_v24, %v2365_v62  ;;  %v730_v27 = vpop.f32.mrb[31].mxu0  ;;  %857 = vadd.xlane.f32.xlu1 %v798_v23  ;;  %1839 = vmatmul.mubr.f32.gmra.mrb[28].mxu1 %v726_v20 }
 0x12f   : > { %v731_v28 = vadd.f32 %v2365_v62, %v730_v27  ;;  %859 = vadd.xlane.f32.xlu0 %v799_v25  ;;  %v1250_v62 = vld [vmem:[%s2646_s4 + $0x8] sm:$0xff] }
 0x130   : > { %770 = vst [vmem:[%s2371_s16 + $0xf8] sm:$0xff] %v736_v26  ;;  %v802_v31 = vmul.f32 %v736_v26, %v736_v26  ;;  %v1920_v34 = vpack.c.bf16 %v1250_v62, %v1249_v33 }
 0x131   : > { %769 = vst [vmem:[%s2371_s16 + $0xf0] sm:$0xff] %v731_v28  ;;  %1841 = vmatprep.mubr.f32.mxu1 %v731_v28  ;;  %v801_v30 = vmul.f32 %v731_v28, %v731_v28  ;;  %s2126_s16 = smov [#allocation4]  }
 0x132   : > { %861 = vadd.xlane.f32.xlu1 %v800_v29  ;;  %1842 = vmatmul.mubr.f32.gmra.mrb[30].mxu1 %v736_v26  ;;  %s2003_s17 = sshll.u32 %s2126_s16, 4  ;;  %s2004_s17 = int_to_ptr.vmem [resolvable:$false] %s2003_s17 }
 0x133   : > { %863 = vadd.xlane.f32.xlu0 %v801_v30  ;;  %1921 = vmatpush3.bf16.msra.mxu0 %v1920_v34  ;;  %p2006_p0 = scmp.lt.s32.totalorder %s2540_s23, %s2004_s17 }
 0x134   : > { %1922 = vmatprep.subr.bf16.mxu0 %v2123_v32 }
 0x136   : > { %865 = vadd.xlane.f32.xlu1 %v802_v31 }
 0x137   : > { %1924 = vmatpush3.bf16.msra.mxu0 %v1923_v37 }
 0x138   : > { %1925 = vmatprep.subr.bf16.mxu0 %v2123_v32 }
 0x13b   : > { %1927 = vmatpush3.bf16.msra.mxu0 %v1926_v41 }
 0x13c   : > { %1928 = vmatprep.subr.bf16.mxu0 %v2123_v32 }
 0x13f   : > { %1930 = vmatpush3.bf16.msra.mxu0 %v1929_v44 }
 0x140   : > { %1931 = vmatprep.subr.bf16.mxu0 %v2123_v32 }
 0x143   : > { %1933 = vmatpush3.bf16.msra.mxu0 %v1932_v47 }
 0x144   : > { %1934 = vmatprep.subr.bf16.mxu0 %v2123_v32 }
 0x147   : > { %1936 = vmatpush3.bf16.msra.mxu0 %v1935_v50 }
 0x148   : > { %1937 = vmatprep.subr.bf16.mxu0 %v2123_v32 }
 0x14b   : > { %1939 = vmatpush3.bf16.msra.mxu0 %v1938_v55 }
 0x14c   : > { %1940 = vmatprep.subr.bf16.mxu0 %v2123_v32 }
 0x14f   : > { %1942 = vmatpush3.bf16.msra.mxu0 %v1941_v60 }
 0x183   : > { %v806_v54 = vpop.xlane.xlu0 %805 }
 0x187   : > { %v810_v51 = vpop.xlane.xlu1 %809 }
 0x188   : > { %v804_v59 = vpop.xlane.xlu0 %803 }
 0x18b   : > { %v808_v58 = vpop.xlane.xlu1 %807 }
 0x18c   : > { %v812_v63 = vpop.xlane.xlu0 %811 }
 0x18f   : > { %v814_v61 = vpop.xlane.xlu1 %813 }
 0x190   : > { %v816_v1 = vpop.xlane.xlu0 %815 }
 0x193   : > { %v818_v0 = vpop.xlane.xlu1 %817 }
 0x194   : > { %v820_v3 = vpop.xlane.xlu0 %819 }
 0x197   : > { %v822_v2 = vpop.xlane.xlu1 %821 }
 0x198   : > { %v824_v6 = vpop.xlane.xlu0 %823 }
 0x19b   : > { %v826_v4 = vpop.xlane.xlu1 %825 }
 0x19c   : > { %v828_v17 = vpop.xlane.xlu0 %827 }
 0x19f   : > { %v830_v15 = vpop.xlane.xlu1 %829 }
 0x1a0   : > { %v832_v28 = vpop.xlane.xlu0 %831 }
 0x1a3   : > { %v834_v25 = vpop.xlane.xlu1 %833 }
 0x1a4   : > { %v836_v42 = vpop.xlane.xlu0 %835 }
 0x1a7   : > { %v838_v39 = vpop.xlane.xlu1 %837 }
 0x1a8   : > { %v840_v55 = vpop.xlane.xlu0 %839 }
 0x1ab   : > { %v842_v52 = vpop.xlane.xlu1 %841 }
 0x1c9   : > { %v1798_v5 = vpop.f32.mrb[0].mxu1 }
 0x1ca   : > { %v1109_v7 = vadd.f32 %v1798_v5, %v806_v54  ;;  %v949_v8 = vpop.f32.mrb[1].mxu1 }
 0x1cb   : > { %v1108_v9 = vadd.f32 %v949_v8, %v804_v59 }
 0x1cc   : > { %v1141_v10 = vmax.f32 %v1109_v7, 0.0  ;;  %v844_v7 = vpop.xlane.xlu0 %843 }
 0x1cd   : > { %v1140_v11 = vmax.f32 %v1108_v9, 0.0  ;;  %v1801_v12 = vpop.f32.mrb[2].mxu1 }
 0x1ce   : > { %1173 = vst [vmem:[%s2489_s26 + $0x8] sm:$0xff] %v1141_v10  ;;  %v1111_v13 = vadd.f32 %v1801_v12, %v810_v51  ;;  %v959_v14 = vpop.f32.mrb[3].mxu1 }
 0x1cf   : > { %1172 = vst [vmem:[%s2489_s26] sm:$0xff] %v1140_v11  ;;  %v1110_v16 = vadd.f32 %v959_v14, %v808_v58 }
 0x1d0   : > { %v1143_v18 = vmax.f32 %v1111_v13, 0.0 }
 0x1d1   : > { %v1142_v19 = vmax.f32 %v1110_v16, 0.0  ;;  %v1804_v20 = vpop.f32.mrb[4].mxu1 }
 0x1d2   : > { %1175 = vst [vmem:[%s2489_s26 + $0x18] sm:$0xff] %v1143_v18  ;;  %v1113_v21 = vadd.f32 %v1804_v20, %v814_v61  ;;  %v969_v22 = vpop.f32.mrb[5].mxu1  ;;  %v848_v20 = vpop.xlane.xlu0 %847 }
 0x1d3   : > { %1174 = vst [vmem:[%s2489_s26 + $0x10] sm:$0xff] %v1142_v19  ;;  %v1112_v23 = vadd.f32 %v969_v22, %v812_v63 }
 0x1d4   : > { %v1145_v24 = vmax.f32 %v1113_v21, 0.0 }
 0x1d5   : > { %v1144_v26 = vmax.f32 %v1112_v23, 0.0  ;;  %v1807_v27 = vpop.f32.mrb[6].mxu1 }
 0x1d6   : > { %1177 = vst [vmem:[%s2489_s26 + $0x28] sm:$0xff] %v1145_v24  ;;  %v1205_v29 = vmin.f32 %v1141_v10, %v1145_v24  ;;  %v1115_v30 = vadd.f32 %v1807_v27, %v818_v0  ;;  %v979_v31 = vpop.f32.mrb[7].mxu1 }
 0x1d7   : > { %1176 = vst [vmem:[%s2489_s26 + $0x20] sm:$0xff] %v1144_v26  ;;  %v1204_v32 = vmin.f32 %v1140_v11, %v1144_v26  ;;  %v1114_v33 = vadd.f32 %v979_v31, %v816_v1 }
 0x1d8   : > { %v1147_v62 = vmax.f32 %v1115_v30, 0.0 }
 0x1d9   : > { %v1146_v34 = vmax.f32 %v1114_v33, 0.0  ;;  %v1810_v35 = vpop.f32.mrb[8].mxu1 }
 0x1da   : > { %1179 = vst [vmem:[%s2489_s26 + $0x38] sm:$0xff] %v1147_v62  ;;  %v1207_v36 = vmin.f32 %v1143_v18, %v1147_v62  ;;  %v1117_v37 = vadd.f32 %v1810_v35, %v822_v2  ;;  %v989_v38 = vpop.f32.mrb[9].mxu1 }
 0x1db   : > { %1178 = vst [vmem:[%s2489_s26 + $0x30] sm:$0xff] %v1146_v34  ;;  %v1206_v40 = vmin.f32 %v1142_v19, %v1146_v34  ;;  %v1116_v41 = vadd.f32 %v989_v38, %v820_v3  ;;  %v852_v34 = vpop.xlane.xlu0 %851 }
 0x1dc   : > { %v1149_v43 = vmax.f32 %v1117_v37, 0.0 }
 0x1dd   : > { %v1148_v44 = vmax.f32 %v1116_v41, 0.0  ;;  %v1813_v45 = vpop.f32.mrb[10].mxu1 }
 0x1de   : > { %1181 = vst [vmem:[%s2489_s26 + $0x48] sm:$0xff] %v1149_v43  ;;  %v1209_v46 = vmin.f32 %v1205_v29, %v1149_v43  ;;  %v1119_v47 = vadd.f32 %v1813_v45, %v826_v4  ;;  %v999_v48 = vpop.f32.mrb[11].mxu1  ;;  %v846_v4 = vpop.xlane.xlu1 %845 }
 0x1df   : > { %1180 = vst [vmem:[%s2489_s26 + $0x40] sm:$0xff] %v1148_v44  ;;  %v1208_v49 = vmin.f32 %v1204_v32, %v1148_v44  ;;  %v1118_v50 = vadd.f32 %v999_v48, %v824_v6 }
 0x1e0   : > { %v1151_v51 = vmax.f32 %v1119_v47, 0.0  ;;  %v856_v47 = vpop.xlane.xlu0 %855 }
 0x1e1   : > { %v1150_v53 = vmax.f32 %v1118_v50, 0.0  ;;  %v1816_v54 = vpop.f32.mrb[12].mxu1 }
 0x1e2   : > { %1183 = vst [vmem:[%s2489_s26 + $0x58] sm:$0xff] %v1151_v51  ;;  %v1211_v56 = vmin.f32 %v1207_v36, %v1151_v51  ;;  %v1121_v57 = vadd.f32 %v1816_v54, %v830_v15  ;;  %v1009_v58 = vpop.f32.mrb[13].mxu1 }
 0x1e3   : > { %1182 = vst [vmem:[%s2489_s26 + $0x50] sm:$0xff] %v1150_v53  ;;  %v1210_v59 = vmin.f32 %v1206_v40, %v1150_v53  ;;  %v1120_v60 = vadd.f32 %v1009_v58, %v828_v17  ;;  %v850_v17 = vpop.xlane.xlu1 %849 }
 0x1e4   : > { %v1153_v61 = vmax.f32 %v1121_v57, 0.0 }
 0x1e5   : > { %v1152_v63 = vmax.f32 %v1120_v60, 0.0  ;;  %v1819_v0 = vpop.f32.mrb[14].mxu1 }
 0x1e6   : > { %1185 = vst [vmem:[%s2489_s26 + $0x68] sm:$0xff] %v1153_v61  ;;  %v1213_v1 = vmin.f32 %v1209_v46, %v1153_v61  ;;  %v1123_v2 = vadd.f32 %v1819_v0, %v834_v25  ;;  %v1019_v3 = vpop.f32.mrb[15].mxu1 }
 0x1e7   : > { %1184 = vst [vmem:[%s2489_s26 + $0x60] sm:$0xff] %v1152_v63  ;;  %v1212_v5 = vmin.f32 %v1208_v49, %v1152_v63  ;;  %v1122_v6 = vadd.f32 %v1019_v3, %v832_v28  ;;  %v854_v32 = vpop.xlane.xlu1 %853  ;;  %v860_v63 = vpop.xlane.xlu0 %859 }
 0x1e8   : > { %v1155_v8 = vmax.f32 %v1123_v2, 0.0 }
 0x1e9   : > { %v1154_v9 = vmax.f32 %v1122_v6, 0.0  ;;  %v1822_v10 = vpop.f32.mrb[16].mxu1 }
 0x1ea   : > { %1187 = vst [vmem:[%s2489_s26 + $0x78] sm:$0xff] %v1155_v8  ;;  %v1215_v11 = vmin.f32 %v1211_v56, %v1155_v8  ;;  %v1125_v12 = vadd.f32 %v1822_v10, %v838_v39  ;;  %v1029_v13 = vpop.f32.mrb[17].mxu1 }
 0x1eb   : > { %1186 = vst [vmem:[%s2489_s26 + $0x70] sm:$0xff] %v1154_v9  ;;  %v1214_v14 = vmin.f32 %v1210_v59, %v1154_v9  ;;  %v1124_v15 = vadd.f32 %v1029_v13, %v836_v42  ;;  %v858_v44 = vpop.xlane.xlu1 %857 }
 0x1ec   : > { %v1157_v16 = vmax.f32 %v1125_v12, 0.0  ;;  %v864_v12 = vpop.xlane.xlu0 %863 }
 0x1ed   : > { %v1156_v18 = vmax.f32 %v1124_v15, 0.0  ;;  %v1825_v19 = vpop.f32.mrb[18].mxu1 }
 0x1ee   : > { %1189 = vst [vmem:[%s2489_s26 + $0x88] sm:$0xff] %v1157_v16  ;;  %v1217_v21 = vmin.f32 %v1213_v1, %v1157_v16  ;;  %v1127_v22 = vadd.f32 %v1825_v19, %v842_v52  ;;  %v1039_v23 = vpop.f32.mrb[19].mxu1 }
 0x1ef   : > { %1188 = vst [vmem:[%s2489_s26 + $0x80] sm:$0xff] %v1156_v18  ;;  %v1216_v24 = vmin.f32 %v1212_v5, %v1156_v18  ;;  %v1126_v25 = vadd.f32 %v1039_v23, %v840_v55  ;;  %v862_v59 = vpop.xlane.xlu1 %861 }
 0x1f0   : > { %v1159_v26 = vmax.f32 %v1127_v22, 0.0 }
 0x1f1   : > { %v1158_v27 = vmax.f32 %v1126_v25, 0.0  ;;  %v1828_v28 = vpop.f32.mrb[20].mxu1 }
 0x1f2   : > { %1191 = vst [vmem:[%s2489_s26 + $0x98] sm:$0xff] %v1159_v26  ;;  %v1219_v29 = vmin.f32 %v1215_v11, %v1159_v26  ;;  %v1129_v30 = vadd.f32 %v1828_v28, %v846_v4  ;;  %v1049_v31 = vpop.f32.mrb[21].mxu1 }
 0x1f3   : > { %1190 = vst [vmem:[%s2489_s26 + $0x90] sm:$0xff] %v1158_v27  ;;  %v1218_v33 = vmin.f32 %v1214_v14, %v1158_v27  ;;  %v1128_v62 = vadd.f32 %v1049_v31, %v844_v7  ;;  %v866_v9 = vpop.xlane.xlu1 %865 }
 0x1f4   : > { %v1161_v35 = vmax.f32 %v1129_v30, 0.0 }
 0x1f5   : > { %v1160_v36 = vmax.f32 %v1128_v62, 0.0  ;;  %v1831_v37 = vpop.f32.mrb[22].mxu1 }
 0x1f6   : > { %1193 = vst [vmem:[%s2489_s26 + $0xa8] sm:$0xff] %v1161_v35  ;;  %v1221_v38 = vmin.f32 %v1217_v21, %v1161_v35  ;;  %v1131_v39 = vadd.f32 %v1831_v37, %v850_v17  ;;  %v1059_v40 = vpop.f32.mrb[23].mxu1 }
 0x1f7   : > { %1192 = vst [vmem:[%s2489_s26 + $0xa0] sm:$0xff] %v1160_v36  ;;  %v1220_v41 = vmin.f32 %v1216_v24, %v1160_v36  ;;  %v1130_v42 = vadd.f32 %v1059_v40, %v848_v20 }
 0x1f8   : > { %v1163_v43 = vmax.f32 %v1131_v39, 0.0 }
 0x1f9   : > { %v1162_v45 = vmax.f32 %v1130_v42, 0.0  ;;  %v1834_v46 = vpop.f32.mrb[24].mxu1 }
 0x1fa   : > { %1195 = vst [vmem:[%s2489_s26 + $0xb8] sm:$0xff] %v1163_v43  ;;  %v1223_v48 = vmin.f32 %v1219_v29, %v1163_v43  ;;  %v1133_v49 = vadd.f32 %v1834_v46, %v854_v32  ;;  %v1069_v50 = vpop.f32.mrb[25].mxu1 }
 0x1fb   : > { %1194 = vst [vmem:[%s2489_s26 + $0xb0] sm:$0xff] %v1162_v45  ;;  %v1222_v51 = vmin.f32 %v1218_v33, %v1162_v45  ;;  %v1132_v52 = vadd.f32 %v1069_v50, %v852_v34 }
 0x1fc   : > { %v1165_v53 = vmax.f32 %v1133_v49, 0.0 }
 0x1fd   : > { %v1164_v54 = vmax.f32 %v1132_v52, 0.0  ;;  %v1837_v55 = vpop.f32.mrb[26].mxu1 }
 0x1fe   : > { %1197 = vst [vmem:[%s2489_s26 + $0xc8] sm:$0xff] %v1165_v53  ;;  %v1225_v56 = vmin.f32 %v1221_v38, %v1165_v53  ;;  %v1135_v57 = vadd.f32 %v1837_v55, %v858_v44  ;;  %v1079_v58 = vpop.f32.mrb[27].mxu1 }
 0x1ff   : > { %1196 = vst [vmem:[%s2489_s26 + $0xc0] sm:$0xff] %v1164_v54  ;;  %v1224_v60 = vmin.f32 %v1220_v41, %v1164_v54  ;;  %v1134_v61 = vadd.f32 %v1079_v58, %v856_v47 }
 0x200   : > { %v1167_v0 = vmax.f32 %v1135_v57, 0.0 }
 0x201   : > { %v1166_v1 = vmax.f32 %v1134_v61, 0.0  ;;  %v1840_v2 = vpop.f32.mrb[28].mxu1 }
 0x202   : > { %1199 = vst [vmem:[%s2489_s26 + $0xd8] sm:$0xff] %v1167_v0  ;;  %v1227_v3 = vmin.f32 %v1223_v48, %v1167_v0  ;;  %v1137_v4 = vadd.f32 %v1840_v2, %v862_v59  ;;  %v1089_v5 = vpop.f32.mrb[29].mxu1 }
 0x203   : > { %1198 = vst [vmem:[%s2489_s26 + $0xd0] sm:$0xff] %v1166_v1  ;;  %v1226_v6 = vmin.f32 %v1222_v51, %v1166_v1  ;;  %v1136_v7 = vadd.f32 %v1089_v5, %v860_v63 }
 0x204   : > { %v1169_v8 = vmax.f32 %v1137_v4, 0.0 }
 0x205   : > { %v1168_v10 = vmax.f32 %v1136_v7, 0.0  ;;  %v1843_v11 = vpop.f32.mrb[30].mxu1 }
 0x206   : > { %1201 = vst [vmem:[%s2489_s26 + $0xe8] sm:$0xff] %v1169_v8  ;;  %v1229_v13 = vmin.f32 %v1225_v56, %v1169_v8  ;;  %v1139_v14 = vadd.f32 %v1843_v11, %v866_v9  ;;  %v1099_v15 = vpop.f32.mrb[31].mxu1 }
 0x207   : > { %1200 = vst [vmem:[%s2489_s26 + $0xe0] sm:$0xff] %v1168_v10  ;;  %v1228_v16 = vmin.f32 %v1224_v60, %v1168_v10  ;;  %v1138_v17 = vadd.f32 %v1099_v15, %v864_v12 }
 0x208   : > { %v1171_v18 = vmax.f32 %v1139_v14, 0.0 }
 0x209   : > { %v1232_v19 = vmin.f32 %v1228_v16, %v1229_v13  ;;  %v1170_v20 = vmax.f32 %v1138_v17, 0.0 }
 0x20a   : > { %1203 = vst [vmem:[%s2489_s26 + $0xf8] sm:$0xff] %v1171_v18  ;;  %v1231_v21 = vmin.f32 %v1227_v3, %v1171_v18 }
 0x20b   : > { %1202 = vst [vmem:[%s2489_s26 + $0xf0] sm:$0xff] %v1170_v20  ;;  %v1230_v22 = vmin.f32 %v1226_v6, %v1170_v20 }
 0x20d   : > { %v1233_v23 = vmin.f32 %v1230_v22, %v1231_v21 }
 0x20f   : > { %v1234_v24 = vmin.f32 %v1232_v19, %v1233_v23 }
 0x211   : > { %v1235_v25 = vrot.slane %v1234_v24, 4 }
 0x213   : > { %v1236_v26 = vmin.f32 %v1234_v24, %v1235_v25 }
 0x215   : > { %v1237_v27 = vrot.slane %v1236_v26, 2 }
 0x217   : > { %v1238_v28 = vmin.f32 %v1236_v26, %v1237_v27 }
 0x219   : > { %v1239_v29 = vrot.slane %v1238_v28, 1 }
 0x21b   : > { %v1240_v30 = vmin.f32 %v1238_v28, %v1239_v29 }
 0x21d   : > { %v1243_v31 = vadd.f32 0.0001, %v1240_v30  ;;  %1241 = vst [vmem:[%s2653_s27] sm:$0x1] %v1240_v30  ;;  %v1242_v32 = vadd.f32 1.0, %v1240_v30  ;;  %s1999_s27 = scalar_lea.vmem %s2540_s23, 16 }
 0x21e   : > { %p2000_p11 = scmp.ne.s32.totalorder %s2540_s23, %s1999_s27 }
 0x21f   : > { %1995 = vrcp.f32 %v1243_v31 }
 0x220   : > { %p2001_p12 = pnand %p2000_p11, %p2219_p5 }
 0x222   : > { %p2002_p13 = pneg %p2001_p12 }
 0x229   : > { %v1996_v33 = vpop.eup %1995 }
 0x22a   : > { %v1245_v62 = vmul.f32 %v1996_v33, %v1242_v32 }
 0x22c   : > { %1997 = vlog2.f32 %v1245_v62 }
 0x236   : > { %v1998_v34 = vpop.eup %1997 }
 0x237   : > { %v1247_v35 = vmul.f32 0.6931472, %v1998_v34 }
 0x239   : > { %1877 = vmatmul.mubr.f32.vlgmr.msra.gmra.mrb[32].mxu0 %v1247_v35  ;;  %1248 = vst [vmem:[%s349_s28] sm:$0x1] %v1247_v35  ;;  %s2005_s28 = scalar_lea.vmem %s2004_s17, 32 }
 0x23a   : > { %p2007_p1 = scmp.lt.s32.totalorder %s2005_s28, %s1999_s27 }
 0x23c   : > { %p2008_p2 = por %p2007_p1, %p2006_p0 }
 0x23e   : > { %p2009_p3 = pnand %p2008_p2, %p2002_p13 }
 0x240   : > { %2012 = shalt.err (!%p2009_p3)
}
 0x241   : > { %s2013_s29 = scalar_lea.hbm %s2538_s22, 16  ;;  %s2017_s16 = scalar_lea.hbm %s2650_s8, 32 }
 0x242   : > { %p2014_p4 = scmp.ne.s32.totalorder %s2538_s22, %s2013_s29  ;;  %p2018_p9 = scmp.lt.u32.totalorder %s2538_s22, %s2650_s8 }
 0x243   : > { %p2019_p10 = scmp.lt.u32.totalorder %s2017_s16, %s2013_s29  ;;  %p2021_p12 = scmp.lt.u32.totalorder %s2013_s29, %s2538_s22 }
 0x244   : > { %p2015_p7 = pnand %p2014_p4, %p2219_p5 }
 0x245   : > { %p2020_p11 = por %p2019_p10, %p2018_p9 }
 0x246   : > { %p2016_p8 = pneg %p2015_p7 }
 0x247   : > { %p2022_p13 = por %p2021_p12, %p2020_p11 }
 0x249   : > { %p2023_p0 = pnand %p2022_p13, %p2016_p8 }
 0x24b   : > { %2026 = shalt.err (!%p2023_p0)
}
 0x24c   : > { %1944 = dma.vmem_to_hbm [thread:$0]  (%p2219_p5), %s2540_s23, 16, %s2538_s22, %s2548_s13  }
 0x24d   : > { %s2658_s27 = scalar_lea.vmem [#allocation2], %s2524_s21  ;;  %s1347_s0 = scalar_lea.sflag [#allocation3], %s2524_s21 }
 0x24e   : > { %s1375_s28 = sshll.u32 %s2658_s27, 4  ;;  %s2127_s29 = smov [#allocation2]   ;;  %s1376_s28 = int_to_ptr.vmem [resolvable:$true] %s1375_s28 }
 0x24f   : > { %s2027_s25 = scalar_lea.vmem %s1376_s28, 16  ;;  %s2031_s26 = sshll.u32 %s2127_s29, 4  ;;  %s2032_s26 = int_to_ptr.vmem [resolvable:$false] %s2031_s26 }
 0x250   : > { %p2028_p1 = scmp.ne.s32.totalorder %s1376_s28, %s2027_s25  ;;  %s2033_s16 = scalar_lea.vmem %s2032_s26, 32 }
 0x251   : > { %p2034_p4 = scmp.lt.s32.totalorder %s1376_s28, %s2032_s26  ;;  %p2035_p7 = scmp.lt.s32.totalorder %s2033_s16, %s2027_s25 }
 0x252   : > { %p2029_p2 = pnand %p2028_p1, %p2219_p5 }
 0x253   : > { %p2036_p8 = por %p2035_p7, %p2034_p4 }
 0x254   : > { %p2030_p3 = pneg %p2029_p2 }
 0x256   : > { %p2037_p9 = pnand %p2036_p8, %p2030_p3 }
 0x258   : > { %2040 = shalt.err (!%p2037_p9)
}
 0x259   : > { %s2041_s22 = scalar_lea.hbm %s2546_s14, 16  ;;  %s2045_s27 = scalar_lea.hbm %s2649_s7, 32 }
 0x25a   : > { %p2042_p10 = scmp.ne.s32.totalorder %s2546_s14, %s2041_s22  ;;  %p2046_p13 = scmp.lt.u32.totalorder %s2546_s14, %s2649_s7 }
 0x25b   : > { %p2047_p0 = scmp.lt.u32.totalorder %s2045_s27, %s2041_s22  ;;  %p2049_p2 = scmp.lt.u32.totalorder %s2041_s22, %s2546_s14 }
 0x25c   : > { %p2043_p11 = pnand %p2042_p10, %p2219_p5 }
 0x25d   : > { %p2048_p1 = por %p2047_p0, %p2046_p13 }
 0x25e   : > { %p2044_p12 = pneg %p2043_p11 }
 0x25f   : > { %p2050_p3 = por %p2049_p2, %p2048_p1 }
 0x261   : > { %p2051_p4 = pnand %p2050_p3, %p2044_p12 }
 0x263   : > { %2054 = shalt.err (!%p2051_p4)
}
 0x264   : > { %1943 = dma.vmem_to_hbm [thread:$0]  (%p2219_p5), %s1376_s28, 16, %s2546_s14, %s1347_s0  }
 0x265   : > { %s355_s25 = scalar_lea.vmem [#allocation6], %s2524_s21  ;;  %s2599_s22 = scalar_lea.hbm %s2651_s9, %s2532_s24 }
 0x266   : > { %s1401_s16 = sshll.u32 %s355_s25, 4  ;;  %s2128_s14 = smov [#allocation6]   ;;  %s2593_s16 = int_to_ptr.vmem [resolvable:$true] %s1401_s16 }
 0x267   : > { %s2055_s27 = scalar_lea.vmem %s2593_s16, 16  ;;  %s2059_s21 = sshll.u32 %s2128_s14, 4  ;;  %s2060_s21 = int_to_ptr.vmem [resolvable:$false] %s2059_s21 }
 0x268   : > { %p2056_p7 = scmp.ne.s32.totalorder %s2593_s16, %s2055_s27  ;;  %s2061_s28 = scalar_lea.vmem %s2060_s21, 32 }
 0x269   : > { %p2062_p10 = scmp.lt.s32.totalorder %s2593_s16, %s2060_s21  ;;  %p2063_p11 = scmp.lt.s32.totalorder %s2061_s28, %s2055_s27 }
 0x26a   : > { %p2057_p8 = pnand %p2056_p7, %p2219_p5 }
 0x26b   : > { %p2064_p12 = por %p2063_p11, %p2062_p10 }
 0x26c   : > { %p2058_p9 = pneg %p2057_p8 }
 0x26e   : > { %p2065_p13 = pnand %p2064_p12, %p2058_p9 }
 0x30c   : > { %v1331_v36 = vpop.f32.mrb[32].mxu0 }
 0x30d   : > { %1335 = vst [vmem:[%s355_s25] sm:$0x1] %v1331_v36  ;;  %v1878_v37 = vpop.f32.mrb[33].mxu0 }
 0x30e   : > { %2068 = shalt.err (!%p2065_p13)
}
 0x30f   : > { %s2069_s24 = scalar_lea.hbm %s2599_s22, 16  ;;  %s2073_s26 = scalar_lea.hbm %s2651_s9, 32 }
 0x310   : > { %p2070_p0 = scmp.ne.s32.totalorder %s2599_s22, %s2069_s24  ;;  %p2074_p3 = scmp.lt.u32.totalorder %s2599_s22, %s2651_s9 }
 0x311   : > { %p2075_p4 = scmp.lt.u32.totalorder %s2073_s26, %s2069_s24  ;;  %p2077_p8 = scmp.lt.u32.totalorder %s2069_s24, %s2599_s22 }
 0x312   : > { %p2071_p1 = pnand %p2070_p0, %p2219_p5 }
 0x313   : > { %p2076_p7 = por %p2075_p4, %p2074_p3 }
 0x314   : > { %p2072_p2 = pneg %p2071_p1 }
 0x315   : > { %p2078_p9 = por %p2077_p8, %p2076_p7 }
 0x317   : > { %p2079_p10 = pnand %p2078_p9, %p2072_p2 }
 0x319   : > { %2082 = shalt.err (!%p2079_p10)
}
 0x31a   : > { %1945 = dma.vmem_to_hbm [thread:$0]  (%p2219_p5), %s2593_s16, 16, %s2599_s22, %s2548_s13  }
 0x31b PF: > { %p1959_p11 = scmp.ge.s32.totalorder %s2121_s12, 2  ;;  %s1429_s17 = sand.u32 1, %s2109_s30  }
 0x31c   : > { %s1430_s27 = scalar_lea.sflag [#allocation3], %s1429_s17 }
 0x31d   : > { %p1950_p12 = pnand %p1959_p11, %p2223_p6 }
 0x31f   : > { %2100 = dma.done.wait (!%p1950_p12), %s1430_s27, 16  }
 0x320   : > { %2102 = vsyncadd (!%p1950_p12), %s1430_s27, 4294967280  ;;  %s2659_s14 = sadd.s32 4294967294, %s2121_s12  }
 0x321   : > { %s1437_s21 = sand.u32 1, %s2659_s14  }
 0x322   : > { %s1438_s28 = scalar_lea.sflag [#allocation5], %s1437_s21 }
 0x323   : > { %2104 = dma.done.wait (!%p1950_p12), %s1438_s28, 32  }
 0x324   : > { %2106 = vsyncadd (!%p1950_p12), %s1438_s28, 4294967264  ;;  %p23_p5 = scmp.ge.s32.totalorder %s2204_s15, 4   ;;  %s2660_s30 = smov %s2113_s10 }
 0x325   : > { %s2661_s10 = smov %s2117_s11  ;;  %s2662_s11 = smov %s2217_s18 }
 0x326   : > { %s2663_s12 = smov %s2204_s15  ;;  %25 = sbr.rel (!%p23_p5) target bundleno = 7 (0x7), region = 131 }
 0x32d   :  { %1450 = vsyncpa [#allocation3], 1 }
 0x32e   :  { %1452 = vsyncpa [#allocation3 + $0x1], 1 }
 0x32f   :  { %1453 = vsyncpa [#allocation5], 1 }
 0x330   :  { %1455 = vsyncpa [#allocation5 + $0x1], 1 }

</bundles_post_ra>
